<compile_context>
chip_gen: v6e
topology: v6e:2x2x1
jax: 0.10.0
libtpu: 0.0.40
codegen_flags: <defaults>
</compile_context>

<pallas_src>
import jax
import jax.numpy as jnp
from jax.experimental import pallas as pl
from jax.experimental.pallas import tpu as pltpu


def wang_resnet_kernel(x_ref,      # (tb, n_in)        batch-major input tile
                       wenc_ref,   # (3H, n_in)        fused [We1; We2; Wi]
                       benc_ref,   # (3H, 1)   f32
                       wh_ref,     # (n_hl, H, H)
                       bh_ref,     # (n_hl, H, 1) f32
                       wot_ref,    # (H, n_out)        output weight (in, out)
                       bo_ref,     # (1, n_out) f32
                       out_ref):   # (tb, n_out)       batch-major output tile
    """Full forward pass for one batch tile, entirely in VMEM.

    Internally feature-major: every activation is (features, tb) so the
    128-lane axis carries the batch (lane-dense tanh / gating)."""
    x = x_ref[...]
    cdt = x.dtype                       # MXU operand dtype (f32 or bf16)
    n_hidden = wh_ref.shape[1]
    n_hl = wh_ref.shape[0]

    # Fused encoders: contract x's feature axis -> (3H, tb), batch on lanes.
    enc = jnp.tanh(
        jax.lax.dot_general(wenc_ref[...], x, (((1,), (1,)), ((), ())),
                            preferred_element_type=jnp.float32)
        + benc_ref[...])
    U = enc[0 * n_hidden:1 * n_hidden, :]
    V = enc[1 * n_hidden:2 * n_hidden, :]
    Z = enc[2 * n_hidden:3 * n_hidden, :]

    D = V - U                           # hoisted out of the hidden-layer loop
    H = U + Z * D                       # == (1 - Z) * U + Z * V

    def body(l, H):
        Zl = jnp.tanh(
            jnp.dot(wh_ref[l], H.astype(cdt),
                    preferred_element_type=jnp.float32)
            + bh_ref[l])
        return U + Zl * D

    H = jax.lax.fori_loop(0, n_hl, body, H, unroll=True)

    # Output layer: contract H's feature axis (axis 0) with wot's rows ->
    # (tb, n_out) batch-major, stored directly (no transpose anywhere).
    out = jax.lax.dot_general(H.astype(cdt), wot_ref[...],
                              (((0,), (0,)), ((), ())),
                              preferred_element_type=jnp.float32)
    out_ref[...] = (out + bo_ref[...]).astype(out_ref.dtype)


def _round_up(v, m):
    return ((v + m - 1) // m) * m


def _choose_batch_tile(B, n_in, n_out, n_hidden, cd_bytes):
    """Pick a batch tile using lane-padded VMEM accounting + generation caps."""
    lanes = 128
    # Per batch row: double-buffered x/out tiles are lane-padded to 128 lanes
    # (n_in, n_out << 128) ...
    io_row = 2 * (_round_up(max(n_in, 1), lanes) * cd_bytes
                  + _round_up(max(n_out, 1), lanes) * 4)
    # ... plus f32 feature-major intermediates (enc 3H, U/V/Z/D/H 5H, ~2H of
    # matmul temporaries / headroom).
    inter_row = 4 * 10 * n_hidden
    per_row = io_row + inter_row
    # 20 MiB tile budget keeps even the largest tile comfortably inside v7x's
    # 64 MiB physical / 32 MiB scoped VMEM (v5e/v6e have 128 MiB physical).
    budget = 20 * 1024 * 1024
    cap = min(8192, max(8, (budget // per_row) // 8 * 8))
    # Prefer >= 4 grid steps: the "parallel" batch axis then feeds both v7x
    # TensorCores with >= 2 steps each, and the x/out DMAs pipeline per core.
    want = max(8, _round_up(-(-B // 4), 8))
    return min(cap, want), per_row


def wang_resnet_forward(x, params, *, batch_tile=None, compute_dtype=None):
    """x: (B, n_input) -> (B, n_output).  Matches the PyTorch forward.

    compute_dtype: optional narrow dtype (e.g. jnp.bfloat16) for the MXU
    operands (x and weights).  Accumulation, biases, tanh and the gating stay
    float32 (safe on v5e, which has no bf16 VPU/EUP)."""
    wenc, benc, wh, bh, wot, bo = params
    B, n_in = x.shape
    n_hidden = wh.shape[1]
    n_hl = wh.shape[0]
    n_out = wot.shape[1]
    out_dtype = x.dtype

    if compute_dtype is not None:
        x = x.astype(compute_dtype)
        wenc = wenc.astype(compute_dtype)
        wh = wh.astype(compute_dtype)
        wot = wot.astype(compute_dtype)
    cd_bytes = jnp.dtype(x.dtype).itemsize

    tb, per_row = _choose_batch_tile(B, n_in, n_out, n_hidden, cd_bytes)
    if batch_tile is not None:
        tb = int(batch_tile)
    assert tb > 0 and (tb % 8 == 0 or tb == B)

    grid_steps = pl.cdiv(B, tb)
    Bp = grid_steps * tb
    # Pad only when the batch is not tile-aligned (single small pad HLO; no
    # transposes).  Padded rows are computed and then sliced off.
    x_in = x if Bp == B else jnp.pad(x, ((0, Bp - B), (0, 0)))

    def full_spec(arr):
        nd = arr.ndim
        # Constant block index -> weight is DMA'd once, reused every grid step.
        return pl.BlockSpec(arr.shape, lambda i, _nd=nd: (0,) * _nd)

    weights = (wenc, benc, wh, bh, wot, bo)
    in_specs = [pl.BlockSpec((tb, n_in), lambda i: (i, 0))] + [
        full_spec(p) for p in weights
    ]
    out_specs = pl.BlockSpec((tb, n_out), lambda i: (i, 0))

    # Explicit scoped-VMEM limit: big tiles compile on v5e (16 MiB scoped
    # default) and the request stays under v7x's 64 MiB physical VMEM.
    weight_bytes = 2 * sum(int(p.size) * jnp.dtype(p.dtype).itemsize
                           for p in weights)
    vmem_est = tb * per_row + weight_bytes + (1 << 20)
    vmem_limit = int(min(max(2 * vmem_est, 16 << 20), 40 << 20))

    # Advisory cost hint so XLA schedules this EUP-heavy / low-byte call sanely.
    flops = (2 * Bp * n_hidden * (3 * n_in + n_hl * n_hidden + n_out)
             + 4 * Bp * n_hidden * (n_hl + 1))
    transcendentals = Bp * n_hidden * (3 + n_hl)
    bytes_accessed = (Bp * n_in * cd_bytes
                      + Bp * n_out * jnp.dtype(out_dtype).itemsize
                      + weight_bytes // 2)
    cost = pl.CostEstimate(flops=int(flops),
                           transcendentals=int(transcendentals),
                           bytes_accessed=int(bytes_accessed))

    out = pl.pallas_call(
        wang_resnet_kernel,
        out_shape=jax.ShapeDtypeStruct((Bp, n_out), out_dtype),
        grid_spec=pltpu.PrefetchScalarGridSpec(
            num_scalar_prefetch=0,
            grid=(grid_steps,),
            in_specs=in_specs,
            out_specs=out_specs,
        ),
        compiler_params=pltpu.CompilerParams(
            dimension_semantics=("parallel",),
            vmem_limit_bytes=vmem_limit),
        cost_estimate=cost,
    )(x_in, *weights)

    return out if Bp == B else out[:B]


def init_params(key, n_input, n_output, n_hidden, n_layers):
    """Deterministic synthetic parameters (uniform, PyTorch-Linear-like scale).

    Layout chosen for the kernel:
      wenc: (3H, n_input) = [We1; We2; Wi]   (PyTorch (out, in) layout)
      benc: (3H, 1)
      wh:   (n_hl, H, H),  bh: (n_hl, H, 1)
      wot:  (H, n_output)  output weight pre-transposed to (in, out)
      bo:   (1, n_output)
    """
    assert n_layers >= 3, "need at least one hidden layer (N_LAYERS >= 3)"
    keys = jax.random.split(key, 10)

    def linear(kw, kb, fan_in, fan_out):
        bound = 1.0 / float(fan_in) ** 0.5
        w = jax.random.uniform(kw, (fan_out, fan_in), jnp.float32, -bound, bound)
        b = jax.random.uniform(kb, (fan_out,), jnp.float32, -bound, bound)
        return w, b

    we1, be1 = linear(keys[0], keys[1], n_input, n_hidden)
    we2, be2 = linear(keys[2], keys[3], n_input, n_hidden)
    wi, bi = linear(keys[4], keys[5], n_input, n_hidden)
    wenc = jnp.concatenate([we1, we2, wi], axis=0)            # (3H, n_in)
    benc = jnp.concatenate([be1, be2, bi], axis=0)[:, None]   # (3H, 1)

    n_hl = n_layers - 2
    bound = 1.0 / float(n_hidden) ** 0.5
    wh = jax.random.uniform(keys[6], (n_hl, n_hidden, n_hidden),
                            jnp.float32, -bound, bound)
    bh = jax.random.uniform(keys[7], (n_hl, n_hidden, 1),
                            jnp.float32, -bound, bound)

    wo, bo = linear(keys[8], keys[9], n_hidden, n_output)
    return (wenc, benc, wh, bh, wo.T, bo[None, :])


def wang_resnet_ref(x, params):
    """Pure-JAX reference matching the PyTorch forward exactly.

    Uses HIGHEST matmul precision so the f32 reference is not silently run in
    bf16 by the TPU backend."""
    hi = jax.lax.Precision.HIGHEST
    wenc, benc, wh, bh, wot, bo = params
    nh = wh.shape[1]
    we1, we2, wi = wenc[:nh], wenc[nh:2 * nh], wenc[2 * nh:]
    be1, be2, bi = benc[:nh, 0], benc[nh:2 * nh, 0], benc[2 * nh:, 0]
    U = jnp.tanh(jnp.dot(x, we1.T, precision=hi) + be1)
    V = jnp.tanh(jnp.dot(x, we2.T, precision=hi) + be2)
    Z = jnp.tanh(jnp.dot(x, wi.T, precision=hi) + bi)
    H = (1.0 - Z) * U + Z * V
    for l in range(wh.shape[0]):
        Z = jnp.tanh(jnp.dot(H, wh[l].T, precision=hi) + bh[l, :, 0])
        H = (1.0 - Z) * U + Z * V
    return jnp.dot(H, wot, precision=hi) + bo


if __name__ == "__main__":
    # PINN-style shapes: N_INPUT=4, N_OUTPUT=2, N_HIDDEN=32, N_LAYERS=4
    # (=> 2 gated hidden layers).  Batch of 1000 collocation points exercises
    # the tile heuristic (tile 256, grid of 4 "parallel" steps) and the
    # tile-alignment pad path (1000 -> 1024).
    N_INPUT, N_OUTPUT, N_HIDDEN, N_LAYERS = 4, 2, 32, 4
    BATCH = 1000

    key = jax.random.PRNGKey(0)
    kx, kp = jax.random.split(key)
    x = jax.random.normal(kx, (BATCH, N_INPUT), jnp.float32)
    params = init_params(kp, N_INPUT, N_OUTPUT, N_HIDDEN, N_LAYERS)

    ref = wang_resnet_ref(x, params)

    # f32 path (tolerance allows for the H = U + Z*(V-U) gate rewrite and for
    # MXU f32 pass-count differences vs the HIGHEST-precision reference).
    out = jax.block_until_ready(wang_resnet_forward(x, params))
    assert out.shape == (BATCH, N_OUTPUT)
    assert jnp.allclose(out, ref, atol=2e-3, rtol=2e-3), "f32 mismatch vs reference"

    # bf16 MXU-operand path (tanh/gating/accumulation remain f32).
    out_bf16 = jax.block_until_ready(
        wang_resnet_forward(x, params, compute_dtype=jnp.bfloat16))
    assert out_bf16.shape == (BATCH, N_OUTPUT)
    assert bool(jnp.all(jnp.isfinite(out_bf16)))
    assert jnp.allclose(out_bf16, ref, atol=6e-2, rtol=6e-2), "bf16 mismatch vs reference"

    print("KERNEL_OK")
</pallas_src>

<mosaic_0001>
module attributes {stable_mosaic.version = 11 : i64} {
  func.func @wang_resnet_kernel(%arg0: i32, %arg1: memref<256x4xf32, #tpu.memory_space<vmem>>, %arg2: memref<96x4xf32, #tpu.memory_space<vmem>>, %arg3: memref<96x1xf32, #tpu.memory_space<vmem>>, %arg4: memref<2x32x32xf32, #tpu.memory_space<vmem>>, %arg5: memref<2x32x1xf32, #tpu.memory_space<vmem>>, %arg6: memref<32x2xf32, #tpu.memory_space<vmem>>, %arg7: memref<1x2xf32, #tpu.memory_space<vmem>>, %arg8: memref<256x2xf32, #tpu.memory_space<vmem>>) attributes {dimension_semantics = [#tpu.dimension_semantics<parallel>], iteration_bounds = array<i64: 4>, scalar_prefetch = 0 : i64, scratch_operands = 0 : i64, tpu.core_type = #tpu.core_type<tc>, window_params = [{transform_indices = @transform_0, window_bounds = array<i64: 256, 4>}, {pipeline_mode = #tpu.pipeline_mode<synchronous>, transform_indices = @transform_1, window_bounds = array<i64: 96, 4>}, {pipeline_mode = #tpu.pipeline_mode<synchronous>, transform_indices = @transform_2, window_bounds = array<i64: 96, 1>}, {pipeline_mode = #tpu.pipeline_mode<synchronous>, transform_indices = @transform_3, window_bounds = array<i64: 2, 32, 32>}, {pipeline_mode = #tpu.pipeline_mode<synchronous>, transform_indices = @transform_4, window_bounds = array<i64: 2, 32, 1>}, {pipeline_mode = #tpu.pipeline_mode<synchronous>, transform_indices = @transform_5, window_bounds = array<i64: 32, 2>}, {pipeline_mode = #tpu.pipeline_mode<synchronous>, transform_indices = @transform_6, window_bounds = array<i64: 1, 2>}, {transform_indices = @transform_7, window_bounds = array<i64: 256, 2>}]} {
    %c0 = arith.constant 0 : index
    %c0_0 = arith.constant 0 : index
    %0 = vector.load %arg1[%c0, %c0_0] : memref<256x4xf32, #tpu.memory_space<vmem>>, vector<256x4xf32>
    %c0_1 = arith.constant 0 : index
    %c0_2 = arith.constant 0 : index
    %1 = vector.load %arg2[%c0_1, %c0_2] : memref<96x4xf32, #tpu.memory_space<vmem>>, vector<96x4xf32>
    %cst = arith.constant dense<0.000000e+00> : vector<96x256xf32>
    %2 = tpu.matmul %1, %0, %cst {dimension_numbers = #tpu.dot_dimension_numbers<[1], [1], [0], [0], [0, 0, 1, 0], [], []>} : vector<96x4xf32>, vector<256x4xf32>, vector<96x256xf32> -> vector<96x256xf32>
    %c0_3 = arith.constant 0 : index
    %c0_4 = arith.constant 0 : index
    %3 = vector.load %arg3[%c0_3, %c0_4] : memref<96x1xf32, #tpu.memory_space<vmem>>, vector<96x1xf32>
    %4 = vector.broadcast %3 : vector<96x1xf32> to vector<96x256xf32>
    %5 = arith.addf %2, %4 : vector<96x256xf32>
    %6 = math.tanh %5 : vector<96x256xf32>
    %7 = vector.extract_strided_slice %6 {offsets = [0, 0], sizes = [32, 256], strides = [1, 1]} : vector<96x256xf32> to vector<32x256xf32>
    %8 = vector.extract_strided_slice %6 {offsets = [32, 0], sizes = [32, 256], strides = [1, 1]} : vector<96x256xf32> to vector<32x256xf32>
    %9 = vector.extract_strided_slice %6 {offsets = [64, 0], sizes = [32, 256], strides = [1, 1]} : vector<96x256xf32> to vector<32x256xf32>
    %10 = arith.subf %8, %7 : vector<32x256xf32>
    %11 = arith.mulf %9, %10 : vector<32x256xf32>
    %12 = arith.addf %7, %11 : vector<32x256xf32>
    %c0_i32 = arith.constant 0 : i32
    %13 = arith.index_cast %c0_i32 : i32 to index
    %c0_5 = arith.constant 0 : index
    %c0_6 = arith.constant 0 : index
    %14 = vector.load %arg4[%13, %c0_5, %c0_6] : memref<2x32x32xf32, #tpu.memory_space<vmem>>, vector<1x32x32xf32>
    %15 = vector.shape_cast %14 : vector<1x32x32xf32> to vector<32x32xf32>
    %cst_7 = arith.constant dense<0.000000e+00> : vector<32x256xf32>
    %16 = tpu.matmul %15, %12, %cst_7 {dimension_numbers = #tpu.dot_dimension_numbers<[1], [0], [0], [1], [0, 0, 1, 1], [], []>} : vector<32x32xf32>, vector<32x256xf32>, vector<32x256xf32> -> vector<32x256xf32>
    %17 = arith.index_cast %c0_i32 : i32 to index
    %c0_8 = arith.constant 0 : index
    %c0_9 = arith.constant 0 : index
    %18 = vector.load %arg5[%17, %c0_8, %c0_9] : memref<2x32x1xf32, #tpu.memory_space<vmem>>, vector<1x32x1xf32>
    %19 = vector.shape_cast %18 : vector<1x32x1xf32> to vector<32x1xf32>
    %20 = vector.broadcast %19 : vector<32x1xf32> to vector<32x256xf32>
    %21 = arith.addf %16, %20 : vector<32x256xf32>
    %22 = math.tanh %21 : vector<32x256xf32>
    %23 = arith.mulf %22, %10 : vector<32x256xf32>
    %24 = arith.addf %7, %23 : vector<32x256xf32>
    %c1_i32 = arith.constant 1 : i32
    %25 = arith.index_cast %c1_i32 : i32 to index
    %c0_10 = arith.constant 0 : index
    %c0_11 = arith.constant 0 : index
    %26 = vector.load %arg4[%25, %c0_10, %c0_11] : memref<2x32x32xf32, #tpu.memory_space<vmem>>, vector<1x32x32xf32>
    %27 = vector.shape_cast %26 : vector<1x32x32xf32> to vector<32x32xf32>
    %cst_12 = arith.constant dense<0.000000e+00> : vector<32x256xf32>
    %28 = tpu.matmul %27, %24, %cst_12 {dimension_numbers = #tpu.dot_dimension_numbers<[1], [0], [0], [1], [0, 0, 1, 1], [], []>} : vector<32x32xf32>, vector<32x256xf32>, vector<32x256xf32> -> vector<32x256xf32>
    %29 = arith.index_cast %c1_i32 : i32 to index
    %c0_13 = arith.constant 0 : index
    %c0_14 = arith.constant 0 : index
    %30 = vector.load %arg5[%29, %c0_13, %c0_14] : memref<2x32x1xf32, #tpu.memory_space<vmem>>, vector<1x32x1xf32>
    %31 = vector.shape_cast %30 : vector<1x32x1xf32> to vector<32x1xf32>
    %32 = vector.broadcast %31 : vector<32x1xf32> to vector<32x256xf32>
    %33 = arith.addf %28, %32 : vector<32x256xf32>
    %34 = math.tanh %33 : vector<32x256xf32>
    %35 = arith.mulf %34, %10 : vector<32x256xf32>
    %36 = arith.addf %7, %35 : vector<32x256xf32>
    %c2_i32 = arith.constant 2 : i32
    %c0_15 = arith.constant 0 : index
    %c0_16 = arith.constant 0 : index
    %37 = vector.load %arg6[%c0_15, %c0_16] : memref<32x2xf32, #tpu.memory_space<vmem>>, vector<32x2xf32>
    %cst_17 = arith.constant dense<0.000000e+00> : vector<256x2xf32>
    %38 = tpu.matmul %36, %37, %cst_17 {dimension_numbers = #tpu.dot_dimension_numbers<[0], [0], [1], [1], [0, 1, 1, 1], [], []>} : vector<32x256xf32>, vector<32x2xf32>, vector<256x2xf32> -> vector<256x2xf32>
    %c0_18 = arith.constant 0 : index
    %c0_19 = arith.constant 0 : index
    %39 = vector.load %arg7[%c0_18, %c0_19] : memref<1x2xf32, #tpu.memory_space<vmem>>, vector<1x2xf32>
    %40 = vector.broadcast %39 : vector<1x2xf32> to vector<256x2xf32>
    %41 = arith.addf %38, %40 : vector<256x2xf32>
    %c0_20 = arith.constant 0 : index
    %c0_21 = arith.constant 0 : index
    %42 = vector.load %arg8[%c0_20, %c0_21] : memref<256x2xf32, #tpu.memory_space<vmem>>, vector<256x2xf32>
    tpu.vector_store %arg8[%c0_20, %c0_21], %41 {strides = array<i32>} : memref<256x2xf32, #tpu.memory_space<vmem>>, vector<256x2xf32>,
    return
  }
  func.func @transform_0(%arg0: i32) -> (i32, i32) {
    %c0_i32 = arith.constant 0 : i32
    %c0_i32_0 = arith.constant 0 : i32
    return %arg0, %c0_i32 : i32, i32
  }
  func.func @transform_1(%arg0: i32) -> (i32, i32) {
    %c0_i32 = arith.constant 0 : i32
    %c0_i32_0 = arith.constant 0 : i32
    %c0_i32_1 = arith.constant 0 : i32
    return %c0_i32, %c0_i32_0 : i32, i32
  }
  func.func @transform_2(%arg0: i32) -> (i32, i32) {
    %c0_i32 = arith.constant 0 : i32
    %c0_i32_0 = arith.constant 0 : i32
    %c0_i32_1 = arith.constant 0 : i32
    return %c0_i32, %c0_i32_0 : i32, i32
  }
  func.func @transform_3(%arg0: i32) -> (i32, i32, i32) {
    %c0_i32 = arith.constant 0 : i32
    %c0_i32_0 = arith.constant 0 : i32
    %c0_i32_1 = arith.constant 0 : i32
    %c0_i32_2 = arith.constant 0 : i32
    return %c0_i32, %c0_i32_0, %c0_i32_1 : i32, i32, i32
  }
  func.func @transform_4(%arg0: i32) -> (i32, i32, i32) {
    %c0_i32 = arith.constant 0 : i32
    %c0_i32_0 = arith.constant 0 : i32
    %c0_i32_1 = arith.constant 0 : i32
    %c0_i32_2 = arith.constant 0 : i32
    return %c0_i32, %c0_i32_0, %c0_i32_1 : i32, i32, i32
  }
  func.func @transform_5(%arg0: i32) -> (i32, i32) {
    %c0_i32 = arith.constant 0 : i32
    %c0_i32_0 = arith.constant 0 : i32
    %c0_i32_1 = arith.constant 0 : i32
    return %c0_i32, %c0_i32_0 : i32, i32
  }
  func.func @transform_6(%arg0: i32) -> (i32, i32) {
    %c0_i32 = arith.constant 0 : i32
    %c0_i32_0 = arith.constant 0 : i32
    %c0_i32_1 = arith.constant 0 : i32
    return %c0_i32, %c0_i32_0 : i32, i32
  }
  func.func @transform_7(%arg0: i32) -> (i32, i32) {
    %c0_i32 = arith.constant 0 : i32
    %c0_i32_0 = arith.constant 0 : i32
    return %arg0, %c0_i32 : i32, i32
  }
}

</mosaic_0001>

<bundles_post_ra>
// kernel: tpu_custom_call.1
= control target key start
LH: loop header
LB: loop body
LE: loop exit
PB: predicated region body
PF: predicated region fallthrough
CT: control target
= control target key end

     0   :  { %s1904_s24 = smov 0   ;;  %s2397_s0 = inlined_call_operand.vmem [shape: f32[1024,4], index: 0, kind: input, shape index: {}]   ;;  %s2398_s1 = inlined_call_operand.vmem [shape: f32[96,4], index: 1, kind: input, shape index: {}]   ;;  %s2399_s2 = inlined_call_operand.vmem [shape: f32[96,1], index: 2, kind: input, shape index: {}]   ;;  %s2400_s3 = inlined_call_operand.vmem [shape: f32[2,32,32], index: 3, kind: input, shape index: {}]   ;;  %s2401_s4 = inlined_call_operand.vmem [shape: f32[2,32,1], index: 4, kind: input, shape index: {}]   ;;  %s2402_s5 = inlined_call_operand.vmem [shape: f32[32,2], index: 5, kind: input, shape index: {}]   ;;  %s2403_s6 = inlined_call_operand.vmem [shape: f32[1,2], index: 6, kind: input, shape index: {}]   ;;  %s2404_s7 = inlined_call_operand.vmem [shape: f32[1024,2], index: 7, kind: output, shape index: {}]  }
   0x1 LB: > { %s1510_s25 = sadd.s32 4294967295, %s1860_s24   ;;  %p1514_p0 = scmp.ge.s32.totalorder %s1860_s24, 1  ;;  %s1860_s24 = sphi %s1904_s24, %s17_s24  }
   0x2   : > { %p238_p1 = scmp.lt.s32.totalorder %s1860_s24, 5 }
   0x4   : > { %p239_p2 = pnand %p1514_p0, %p238_p1 }
   0x5   : > { %s1515_s26 = sshll.u32 (!%p239_p2), %s1510_s25, 5 }
   0x6   : > { %242 = sbr.rel (%p239_p2) target bundleno = 1209 (0x4b9), region = 48  ;;  %p271_p3 = scmp.lt.s32.totalorder (!%p239_p2), %s1515_s26, 127 }
   0xb   : > { %vm398_vm0 = vcmask 31744   ;;  %v1915_v0 = vld [vmem:[%s2398_s1] sm:$0xff]  ;;  %v1862_v1 = vmov 0   ;;  %s2406_s26 = smov (!%p271_p3, %s1515_s26), 127  ;;  %v329_v2 = vld [vmem:[%s2399_s2 + $0x18] sm:$0xff]  ;;  %v328_v3 = vld [vmem:[%s2399_s2 + $0x10] sm:$0xff] }
   0xc   : > { %1646 = vmatprep.mubr.msk.f32.mxu0 %vm398_vm0, %v1915_v0  ;;  %1772 = vset.pattern.permute.xlu0 %v1862_v1  ;;  %s1516_s8 = sshll.u32 %s2406_s26, 3  ;;  %v333_v4 = vld [vmem:[%s2399_s2 + $0x38] sm:$0xff]  ;;  %v332_v5 = vld [vmem:[%s2399_s2 + $0x30] sm:$0xff]  ;;  %v327_v12 = vld [vmem:[%s2399_s2 + $0x8] sm:$0xff]  ;;  %vm744_vm1 = vcmask 261120   ;;  %vm1421_vm2 = vcmask 15360  }
   0xd   : > { %1773 = vset.pattern.permute.xlu1 %v1862_v1  ;;  %355 = vperm.xlu0 %1772, %v329_v2   ;;  %s1933_s13 = scalar_lea.vmem %s2397_s0, %s1516_s8  ;;  %v337_v10 = vld [vmem:[%s2399_s2 + $0x58] sm:$0xff]  ;;  %v331_v14 = vld [vmem:[%s2399_s2 + $0x28] sm:$0xff]  ;;  %v336_v16 = vld [vmem:[%s2399_s2 + $0x50] sm:$0xff]  ;;  %v1863_v1 = vmov 0.0   ;;  %s2296_s21 = scalar_lea.vmem %s2404_s7, %s1516_s8 }
   0xe   : > { %350 = vperm.xlu1 %1773, %v328_v3   ;;  %v313_v6 = vld [vmem:[%s1933_s13 + $0xf8] sm:$0xff]  ;;  %v312_v8 = vld [vmem:[%s1933_s13 + $0xf0] sm:$0xff]  ;;  %v311_v11 = vld [vmem:[%s1933_s13 + $0xe8] sm:$0xff]  ;;  %821 = vmatprep.mubr.f32.mxu1 %v1863_v1 }
   0xf   : > { %v297_v7 = vld [vmem:[%s1933_s13 + $0x78] sm:$0xff]  ;;  %1614 = vmatprep.subr.msk.mxu0 %vm398_vm0, %v313_v6  ;;  %v296_v9 = vld [vmem:[%s1933_s13 + $0x70] sm:$0xff]  ;;  %v295_v13 = vld [vmem:[%s1933_s13 + $0x68] sm:$0xff] }
  0x10   : > { %1615 = vmatpush3.xpose.msk.msra.mxu0 %vm398_vm0, %v297_v7  ;;  %v310_v15 = vld [vmem:[%s1933_s13 + $0xe0] sm:$0xff]  ;;  %v309_v19 = vld [vmem:[%s1933_s13 + $0xd8] sm:$0xff]  ;;  %v335_v22 = vld [vmem:[%s2399_s2 + $0x48] sm:$0xff] }
  0x11   : > { %375 = vperm.xlu0 %1772, %v333_v4   ;;  %1616 = vmatprep.subr.msk.mxu0 %vm398_vm0, %v312_v8  ;;  %v294_v17 = vld [vmem:[%s1933_s13 + $0x60] sm:$0xff]  ;;  %v293_v21 = vld [vmem:[%s1933_s13 + $0x58] sm:$0xff]  ;;  %v308_v23 = vld [vmem:[%s1933_s13 + $0xd0] sm:$0xff] }
  0x12   : > { %370 = vperm.xlu1 %1773, %v332_v5   ;;  %v326_v18 = vld [vmem:[%s2399_s2] sm:$0xff]  ;;  %v292_v25 = vld [vmem:[%s1933_s13 + $0x50] sm:$0xff]  ;;  %v723_v26 = vld [vmem:[%s2401_s4 + $0x18] sm:$0xff] }
  0x13   : > { %v330_v20 = vld [vmem:[%s2399_s2 + $0x20] sm:$0xff]  ;;  %v307_v27 = vld [vmem:[%s1933_s13 + $0xc8] sm:$0xff]  ;;  %v722_v28 = vld [vmem:[%s2401_s4 + $0x10] sm:$0xff] }
  0x14   : > { %1617 = vmatpush3.xpose.msk.msra.mxu0 %vm398_vm0, %v296_v9  ;;  %v334_v24 = vld [vmem:[%s2399_s2 + $0x40] sm:$0xff]  ;;  %v291_v29 = vld [vmem:[%s1933_s13 + $0x48] sm:$0xff]  ;;  %v305_v35 = vld [vmem:[%s1933_s13 + $0xb8] sm:$0xff] }
  0x15   : > { %395 = vperm.xlu0 %1772, %v337_v10   ;;  %1618 = vmatprep.subr.msk.mxu0 %vm398_vm0, %v311_v11  ;;  %v721_v30 = vld [vmem:[%s2401_s4 + $0x8] sm:$0xff]  ;;  %v306_v31 = vld [vmem:[%s1933_s13 + $0xc0] sm:$0xff]  ;;  %v289_v37 = vld [vmem:[%s1933_s13 + $0x38] sm:$0xff] }
  0x16   : > { %345 = vperm.xlu1 %1773, %v327_v12   ;;  %v720_v32 = vld [vmem:[%s2401_s4] sm:$0xff]  ;;  %v1572_v36 = vld [vmem:[%s2401_s4 + $0x28] sm:$0xff]  ;;  %v1573_v38 = vld [vmem:[%s2401_s4 + $0x30] sm:$0xff] }
  0x17   : > { %v290_v33 = vld [vmem:[%s1933_s13 + $0x40] sm:$0xff]  ;;  %v304_v39 = vld [vmem:[%s1933_s13 + $0xb0] sm:$0xff]  ;;  %v1574_v40 = vld [vmem:[%s2401_s4 + $0x38] sm:$0xff] }
  0x18   : > { %1619 = vmatpush3.xpose.msk.msra.mxu0 %vm398_vm0, %v295_v13  ;;  %v1571_v34 = vld [vmem:[%s2401_s4 + $0x20] sm:$0xff]  ;;  %v288_v41 = vld [vmem:[%s1933_s13 + $0x30] sm:$0xff]  ;;  %v303_v42 = vld [vmem:[%s1933_s13 + $0xa8] sm:$0xff] }
  0x19   : > { %365 = vperm.xlu0 %1772, %v331_v14   ;;  %1620 = vmatprep.subr.msk.mxu0 %vm398_vm0, %v310_v15  ;;  %v287_v43 = vld [vmem:[%s1933_s13 + $0x28] sm:$0xff]  ;;  %v302_v44 = vld [vmem:[%s1933_s13 + $0xa0] sm:$0xff]  ;;  %v301_v46 = vld [vmem:[%s1933_s13 + $0x98] sm:$0xff] }
  0x1a   : > { %390 = vperm.xlu1 %1773, %v336_v16   ;;  %v286_v45 = vld [vmem:[%s1933_s13 + $0x20] sm:$0xff]  ;;  %v285_v47 = vld [vmem:[%s1933_s13 + $0x18] sm:$0xff]  ;;  %v300_v48 = vld [vmem:[%s1933_s13 + $0x90] sm:$0xff] }
  0x1b   : > { %v284_v49 = vld [vmem:[%s1933_s13 + $0x10] sm:$0xff]  ;;  %v299_v50 = vld [vmem:[%s1933_s13 + $0x88] sm:$0xff]  ;;  %v298_v52 = vld [vmem:[%s1933_s13 + $0x80] sm:$0xff] }
  0x1c   : > { %1621 = vmatpush3.xpose.msk.msra.mxu0 %vm398_vm0, %v294_v17  ;;  %v283_v51 = vld [vmem:[%s1933_s13 + $0x8] sm:$0xff]  ;;  %v282_v53 = vld [vmem:[%s1933_s13] sm:$0xff]  ;;  %v316_v55 = vld [vmem:[%s2398_s1 + $0x10] sm:$0xff] }
  0x1d   : > { %340 = vperm.xlu0 %1772, %v326_v18   ;;  %1622 = vmatprep.subr.msk.mxu0 %vm398_vm0, %v309_v19  ;;  %v315_v54 = vld [vmem:[%s2398_s1 + $0x8] sm:$0xff]  ;;  %v317_v56 = vld [vmem:[%s2398_s1 + $0x18] sm:$0xff]  ;;  %v318_v57 = vld [vmem:[%s2398_s1 + $0x20] sm:$0xff] }
  0x1e   : > { %360 = vperm.xlu1 %1773, %v330_v20   ;;  %v319_v58 = vld [vmem:[%s2398_s1 + $0x28] sm:$0xff]  ;;  %v320_v59 = vld [vmem:[%s2398_s1 + $0x30] sm:$0xff]  ;;  %v321_v60 = vld [vmem:[%s2398_s1 + $0x38] sm:$0xff] }
  0x1f   : > { %v322_v61 = vld [vmem:[%s2398_s1 + $0x40] sm:$0xff]  ;;  %v323_v62 = vld [vmem:[%s2398_s1 + $0x48] sm:$0xff]  ;;  %v324_v63 = vld [vmem:[%s2398_s1 + $0x50] sm:$0xff] }
  0x20   : > { %1623 = vmatpush3.xpose.msk.msra.mxu0 %vm398_vm0, %v293_v21 }
  0x21   : > { %385 = vperm.xlu0 %1772, %v335_v22   ;;  %1624 = vmatprep.subr.msk.mxu0 %vm398_vm0, %v308_v23 }
  0x22   : > { %380 = vperm.xlu1 %1773, %v334_v24  }
  0x24   : > { %1625 = vmatpush3.xpose.msk.msra.mxu0 %vm398_vm0, %v292_v25 }
  0x25   : > { %741 = vperm.xlu0 %1772, %v723_v26   ;;  %1626 = vmatprep.subr.msk.mxu0 %vm398_vm0, %v307_v27 }
  0x26   : > { %736 = vperm.xlu1 %1773, %v722_v28  }
  0x28   : > { %1627 = vmatpush3.xpose.msk.msra.mxu0 %vm398_vm0, %v291_v29 }
  0x29   : > { %731 = vperm.xlu0 %1772, %v721_v30   ;;  %1628 = vmatprep.subr.msk.mxu0 %vm398_vm0, %v306_v31 }
  0x2a   : > { %726 = vperm.xlu1 %1773, %v720_v32  }
  0x2c   : > { %1629 = vmatpush3.xpose.msk.msra.mxu0 %vm398_vm0, %v290_v33 }
  0x2d   : > { %882 = vperm.xlu0 %1772, %v1571_v34   ;;  %1630 = vmatprep.subr.msk.mxu0 %vm398_vm0, %v305_v35 }
  0x2e   : > { %887 = vperm.xlu1 %1773, %v1572_v36  }
  0x30   : > { %1631 = vmatpush3.xpose.msk.msra.mxu0 %vm398_vm0, %v289_v37 }
  0x31   : > { %892 = vperm.xlu0 %1772, %v1573_v38   ;;  %1632 = vmatprep.subr.msk.mxu0 %vm398_vm0, %v304_v39 }
  0x32   : > { %897 = vperm.xlu1 %1773, %v1574_v40  }
  0x34   : > { %1633 = vmatpush3.xpose.msk.msra.mxu0 %vm398_vm0, %v288_v41 }
  0x35   : > { %1634 = vmatprep.subr.msk.mxu0 %vm398_vm0, %v303_v42 }
  0x38   : > { %1635 = vmatpush3.xpose.msk.msra.mxu0 %vm398_vm0, %v287_v43 }
  0x39   : > { %1636 = vmatprep.subr.msk.mxu0 %vm398_vm0, %v302_v44 }
  0x3c   : > { %1637 = vmatpush3.xpose.msk.msra.mxu0 %vm398_vm0, %v286_v45 }
  0x3d   : > { %1638 = vmatprep.subr.msk.mxu0 %vm398_vm0, %v301_v46 }
  0x40   : > { %1639 = vmatpush3.xpose.msk.msra.mxu0 %vm398_vm0, %v285_v47 }
  0x41   : > { %1640 = vmatprep.subr.msk.mxu0 %vm398_vm0, %v300_v48 }
  0x44   : > { %1641 = vmatpush3.xpose.msk.msra.mxu0 %vm398_vm0, %v284_v49 }
  0x45   : > { %1642 = vmatprep.subr.msk.mxu0 %vm398_vm0, %v299_v50 }
  0x48   : > { %1643 = vmatpush3.xpose.msk.msra.mxu0 %vm398_vm0, %v283_v51 }
  0x49   : > { %1644 = vmatprep.subr.msk.mxu0 %vm398_vm0, %v298_v52 }
  0x4c   : > { %1645 = vmatpush3.xpose.msk.msra.mxu0 %vm398_vm0, %v282_v53 }
  0x4f   : > { %1647 = vmatmul.mubr.msk.f32.vlgmr.msra.gmra.mxu0 %vm398_vm0, %v1915_v0  ;;  %v325_v0 = vld [vmem:[%s2398_s1 + $0x58] sm:$0xff] }
  0x50   : > { %1648 = vmatprep.mubr.msk.f32.mxu0 %vm398_vm0, %v315_v54 }
  0x53   : > { %1649 = vmatmul.mubr.msk.f32.gmra.mxu0 %vm398_vm0, %v315_v54 }
  0x54   : > { %1650 = vmatprep.mubr.msk.f32.mxu0 %vm398_vm0, %v316_v55 }
  0x57   : > { %1651 = vmatmul.mubr.msk.f32.gmra.mxu0 %vm398_vm0, %v316_v55 }
  0x58   : > { %1652 = vmatprep.mubr.msk.f32.mxu0 %vm398_vm0, %v317_v56 }
  0x5b   : > { %1653 = vmatmul.mubr.msk.f32.gmra.mxu0 %vm398_vm0, %v317_v56 }
  0x5c   : > { %1654 = vmatprep.mubr.msk.f32.mxu0 %vm398_vm0, %v318_v57 }
  0x5f   : > { %1655 = vmatmul.mubr.msk.f32.gmra.mxu0 %vm398_vm0, %v318_v57 }
  0x60   : > { %1656 = vmatprep.mubr.msk.f32.mxu0 %vm398_vm0, %v319_v58 }
  0x63   : > { %1657 = vmatmul.mubr.msk.f32.gmra.mxu0 %vm398_vm0, %v319_v58 }
  0x64   : > { %1658 = vmatprep.mubr.msk.f32.mxu0 %vm398_vm0, %v320_v59 }
  0x67   : > { %1659 = vmatmul.mubr.msk.f32.gmra.mxu0 %vm398_vm0, %v320_v59 }
  0x68   : > { %1660 = vmatprep.mubr.msk.f32.mxu0 %vm398_vm0, %v321_v60 }
  0x6b   : > { %1661 = vmatmul.mubr.msk.f32.gmra.mxu0 %vm398_vm0, %v321_v60 }
  0x6c   : > { %1662 = vmatprep.mubr.msk.f32.mxu0 %vm398_vm0, %v322_v61 }
  0x6f   : > { %1663 = vmatmul.mubr.msk.f32.gmra.mxu0 %vm398_vm0, %v322_v61 }
  0x70   : > { %1664 = vmatprep.mubr.msk.f32.mxu0 %vm398_vm0, %v323_v62 }
  0x73   : > { %1665 = vmatmul.mubr.msk.f32.gmra.mxu0 %vm398_vm0, %v323_v62 }
  0x74   : > { %1666 = vmatprep.mubr.msk.f32.mxu0 %vm398_vm0, %v324_v63 }
  0x77   : > { %1667 = vmatmul.mubr.msk.f32.gmra.mxu0 %vm398_vm0, %v324_v63 }
  0x78   : > { %1668 = vmatprep.mubr.msk.f32.mxu0 %vm398_vm0, %v325_v0 }
  0x7b   : > { %1669 = vmatmul.mubr.msk.f32.gmra.mxu0 %vm398_vm0, %v325_v0 }
  0x88   : > { %v356_v2 = vpop.permute.xlu0 %355 }
  0x89   : > { %v351_v8 = vpop.permute.xlu1 %350 }
  0x8c   : > { %v376_v5 = vpop.permute.xlu0 %375 }
  0x8d   : > { %v371_v13 = vpop.permute.xlu1 %370 }
  0x90   : > { %v2111_v10 = vpop.permute.xlu0 %395 }
  0x91   : > { %v346_v18 = vpop.permute.xlu1 %345 }
  0x94   : > { %v366_v15 = vpop.permute.xlu0 %365 }
  0x95   : > { %v391_v25 = vpop.permute.xlu1 %390 }
  0x98   : > { %v341_v20 = vpop.permute.xlu0 %340 }
  0x99   : > { %v361_v34 = vpop.permute.xlu1 %360 }
  0x9c   : > { %v386_v47 = vpop.permute.xlu0 %385 }
  0x9d   : > { %v381_v61 = vpop.permute.xlu1 %380 }
 0x10f   : > { %v597_v3 = vpop.f32.mrf.mxu0 }
 0x110   : > { %v598_v23 = vadd.f32 %v597_v3, %v341_v20 }
 0x111   : > { %v599_v4 = vpop.f32.mrf.mxu0 }
 0x112   : > { %v600_v24 = vadd.f32 %v599_v4, %v341_v20  ;;  %1774 = vtanh.f32 %v598_v23 }
 0x113   : > { %v603_v6 = vpop.f32.mrf.mxu0 }
 0x114   : > { %v604_v27 = vadd.f32 %v603_v6, %v346_v18  ;;  %1776 = vtanh.f32 %v600_v24 }
 0x115   : > { %v605_v7 = vpop.f32.mrf.mxu0 }
 0x116   : > { %v606_v28 = vadd.f32 %v605_v7, %v346_v18  ;;  %1778 = vtanh.f32 %v604_v27 }
 0x117   : > { %v609_v9 = vpop.f32.mrf.mxu0 }
 0x118   : > { %v610_v30 = vadd.f32 %v609_v9, %v351_v8  ;;  %1780 = vtanh.f32 %v606_v28 }
 0x119   : > { %v611_v11 = vpop.f32.mrf.mxu0 }
 0x11a   : > { %v612_v31 = vadd.f32 %v611_v11, %v351_v8  ;;  %1782 = vtanh.f32 %v610_v30 }
 0x11b   : > { %v615_v12 = vpop.f32.mrf.mxu0 }
 0x11c   : > { %v616_v33 = vadd.f32 %v615_v12, %v356_v2  ;;  %1784 = vtanh.f32 %v612_v31 }
 0x11d   : > { %v617_v14 = vpop.f32.mrf.mxu0 }
 0x11e   : > { %v618_v35 = vadd.f32 %v617_v14, %v356_v2  ;;  %1786 = vtanh.f32 %v616_v33 }
 0x11f   : > { %v621_v16 = vpop.f32.mrf.mxu0  ;;  %v2113_v51 = vpop.eup %1774 }
 0x120   : > { %v622_v37 = vadd.f32 %v621_v16, %v361_v34  ;;  %1788 = vtanh.f32 %v618_v35 }
 0x121   : > { %v623_v17 = vpop.f32.mrf.mxu0  ;;  %v2115_v53 = vpop.eup %1776 }
 0x122   : > { %v624_v38 = vadd.f32 %v623_v17, %v361_v34  ;;  %1790 = vtanh.f32 %v622_v37 }
 0x123   : > { %v627_v19 = vpop.f32.mrf.mxu0  ;;  %v2117_v55 = vpop.eup %1778 }
 0x124   : > { %v628_v40 = vadd.f32 %v627_v19, %v366_v15  ;;  %1792 = vtanh.f32 %v624_v38 }
 0x125   : > { %v629_v21 = vpop.f32.mrf.mxu0  ;;  %v2119_v58 = vpop.eup %1780 }
 0x126   : > { %v630_v41 = vadd.f32 %v629_v21, %v366_v15  ;;  %1794 = vtanh.f32 %v628_v40 }
 0x127   : > { %v633_v22 = vpop.f32.mrf.mxu0  ;;  %v2122_v60 = vpop.eup %1782 }
 0x128   : > { %v634_v43 = vadd.f32 %v633_v22, %v371_v13  ;;  %1796 = vtanh.f32 %v630_v41 }
 0x129   : > { %v635_v26 = vpop.f32.mrf.mxu0  ;;  %v2124_v0 = vpop.eup %1784 }
 0x12a   : > { %v636_v44 = vadd.f32 %v635_v26, %v371_v13  ;;  %1798 = vtanh.f32 %v634_v43 }
 0x12b   : > { %v639_v29 = vpop.f32.mrf.mxu0  ;;  %v2127_v4 = vpop.eup %1786 }
 0x12c   : > { %v640_v46 = vadd.f32 %v639_v29, %v376_v5  ;;  %1800 = vtanh.f32 %v636_v44 }
 0x12d   : > { %v641_v32 = vpop.f32.mrf.mxu0  ;;  %v2129_v6 = vpop.eup %1788 }
 0x12e   : > { %v642_v48 = vadd.f32 %v641_v32, %v376_v5  ;;  %1802 = vtanh.f32 %v640_v46 }
 0x12f   : > { %v645_v36 = vpop.f32.mrf.mxu0  ;;  %v1791_v7 = vpop.eup %1790 }
 0x130   : > { %1804 = vtanh.f32 %v642_v48  ;;  %v646_v5 = vadd.f32 %v645_v36, %v381_v61  ;;  %v2161_v38 = vsub.f32 %v1791_v7, %v2113_v51  ;;  %v717_v48 = vld [vmem:[%s2400_s3 + $0x8] sm:$0xff] }
 0x131   : > { %v647_v39 = vpop.f32.mrf.mxu0  ;;  %v1793_v8 = vpop.eup %1792 }
 0x132   : > { %v648_v2 = vadd.f32 %v647_v39, %v381_v61  ;;  %v2156_v35 = vsub.f32 %v1793_v8, %v2115_v53  ;;  %v737_v61 = vpop.permute.xlu1 %736 }
 0x133   : > { %v651_v42 = vpop.f32.mrf.mxu0  ;;  %v1795_v9 = vpop.eup %1794 }
 0x134   : > { %v652_v62 = vadd.f32 %v651_v42, %v386_v47  ;;  %v2151_v31 = vsub.f32 %v1795_v9, %v2117_v55 }
 0x135   : > { %v653_v45 = vpop.f32.mrf.mxu0  ;;  %v1797_v11 = vpop.eup %1796 }
 0x136   : > { %v654_v50 = vadd.f32 %v653_v45, %v386_v47  ;;  %v2147_v28 = vsub.f32 %v1797_v11, %v2119_v58  ;;  %v716_v47 = vld [vmem:[%s2400_s3] sm:$0xff]  ;;  %v727_v11 = vpop.permute.xlu1 %726 }
 0x137   : > { %v657_v49 = vpop.f32.mrf.mxu0  ;;  %v1799_v12 = vpop.eup %1798 }
 0x138   : > { %v658_v56 = vadd.f32 %v657_v49, %v391_v25  ;;  %1806 = vtanh.f32 %v654_v50  ;;  %v2142_v24 = vsub.f32 %v1799_v12, %v2122_v60  ;;  %v718_v49 = vld [vmem:[%s2400_s3 + $0x10] sm:$0xff]  ;;  %v719_v50 = vld [vmem:[%s2400_s3 + $0x18] sm:$0xff] }
 0x139   : > { %v659_v52 = vpop.f32.mrf.mxu0  ;;  %v1801_v13 = vpop.eup %1800 }
 0x13a   : > { %v660_v54 = vadd.f32 %v659_v52, %v391_v25  ;;  %v2138_v21 = vsub.f32 %v1801_v13, %v2124_v0 }
 0x13b   : > { %v663_v57 = vpop.f32.mrf.mxu0  ;;  %v1803_v14 = vpop.eup %1802 }
 0x13c   : > { %v664_v59 = vadd.f32 %v663_v57, %v2111_v10  ;;  %1808 = vtanh.f32 %v660_v54  ;;  %v2132_v18 = vsub.f32 %v1803_v14, %v2127_v4  ;;  %v742_v54 = vpop.permute.xlu0 %741 }
 0x13d   : > { %v665_v63 = vpop.f32.mrf.mxu0  ;;  %v1805_v15 = vpop.eup %1804 }
 0x13e   : > { %1810 = vtanh.f32 %v664_v59  ;;  %v666_v3 = vadd.f32 %v665_v63, %v2111_v10  ;;  %v2135_v20 = vsub.f32 %v1805_v15, %v2129_v6 }
 0x13f   : > { %1812 = vtanh.f32 %v658_v56 }
 0x140   : > { %1814 = vtanh.f32 %v666_v3 }
 0x141   : > { %1816 = vtanh.f32 %v652_v62  ;;  %v732_v62 = vpop.permute.xlu0 %731 }
 0x142   : > { %1818 = vtanh.f32 %v648_v2 }
 0x143   : > { %1820 = vtanh.f32 %v646_v5 }
 0x145   : > { %v1807_v16 = vpop.eup %1806 }
 0x146   : > { %v703_v34 = vmul.f32 %v1807_v16, %v2147_v28 }
 0x148   : > { %v711_v43 = vadd.f32 %v2119_v58, %v703_v34 }
 0x149   : > { %v1809_v10 = vpop.eup %1808 }
 0x14a   : > { %v705_v27 = vmul.f32 %v1809_v10, %v2138_v21 }
 0x14b   : > { %v1811_v17 = vpop.eup %1810 }
 0x14c   : > { %v1813_v19 = vpop.eup %1812  ;;  %v706_v23 = vmul.f32 %v1811_v17, %v2132_v18  ;;  %v713_v39 = vadd.f32 %v2124_v0, %v705_v27 }
 0x14d   : > { %v1815_v22 = vpop.eup %1814  ;;  %v704_v30 = vmul.f32 %v1813_v19, %v2142_v24 }
 0x14e   : > { %v1817_v25 = vpop.eup %1816  ;;  %v707_v26 = vmul.f32 %v1815_v22, %v2135_v20  ;;  %v714_v36 = vadd.f32 %v2127_v4, %v706_v23 }
 0x14f   : > { %v1819_v29 = vpop.eup %1818  ;;  %v702_v37 = vmul.f32 %v1817_v25, %v2151_v31  ;;  %v712_v41 = vadd.f32 %v2122_v60, %v704_v30 }
 0x150   : > { %v1821_v32 = vpop.eup %1820  ;;  %v715_v33 = vadd.f32 %v2129_v6, %v707_v26  ;;  %v701_v40 = vmul.f32 %v1819_v29, %v2156_v35 }
 0x151   : > { %v700_v42 = vmul.f32 %v1821_v32, %v2161_v38  ;;  %v710_v44 = vadd.f32 %v2117_v55, %v702_v37 }
 0x152   : > { %781 = vmatprep.subr.mxu1 %v715_v33  ;;  %v709_v45 = vadd.f32 %v2115_v53, %v701_v40 }
 0x153   : > { %782 = vmatpush1.msra.mxu1 %v714_v36  ;;  %v708_v46 = vadd.f32 %v2113_v51, %v700_v42 }
 0x154   : > { %783 = vmatprep.subr.mxu1 %v713_v39 }
 0x155   : > { %784 = vmatpush1.msra.mxu1 %v712_v41 }
 0x156   : > { %785 = vmatprep.subr.mxu1 %v711_v43 }
 0x157   : > { %786 = vmatpush1.msra.mxu1 %v710_v44 }
 0x158   : > { %787 = vmatprep.subr.mxu1 %v709_v45 }
 0x159   : > { %788 = vmatpush1.msra.mxu1 %v708_v46 }
 0x15a   : > { %1563 = vmatmul.mubr.msk.f32.vlgmr.msra.gmra.mxu1 %vm744_vm1, %v716_v47 }
 0x15b   : > { %827 = vmatprep.mubr.f32.mxu1 %v1863_v1 }
 0x15e   : > { %1564 = vmatmul.mubr.msk.f32.gmra.mxu1 %vm744_vm1, %v717_v48  ;;  %v1567_v48 = vld [vmem:[%s2400_s3 + $0x20] sm:$0xff] }
 0x15f   : > { %833 = vmatprep.mubr.f32.mxu1 %v1863_v1 }
 0x162   : > { %1565 = vmatmul.mubr.msk.f32.gmra.mxu1 %vm744_vm1, %v718_v49  ;;  %v1568_v49 = vld [vmem:[%s2400_s3 + $0x28] sm:$0xff] }
 0x163   : > { %839 = vmatprep.mubr.f32.mxu1 %v1863_v1 }
 0x166   : > { %1566 = vmatmul.mubr.msk.f32.gmra.mxu1 %vm744_vm1, %v719_v50  ;;  %v1569_v50 = vld [vmem:[%s2400_s3 + $0x30] sm:$0xff] }
 0x167   : > { %976 = vmatprep.mubr.f32.mxu1 %v1863_v1 }
 0x21a   : > { %v823_v52 = vpop.f32.mrf.mxu1 }
 0x21b   : > { %v824_v16 = vadd.f32 %v823_v52, %v727_v11  ;;  %v1570_v52 = vld [vmem:[%s2400_s3 + $0x38] sm:$0xff] }
 0x21c   : > { %v825_v56 = vpop.f32.mrf.mxu1 }
 0x21d   : > { %v826_v14 = vadd.f32 %v825_v56, %v727_v11 }
 0x21e   : > { %v829_v57 = vpop.f32.mrf.mxu1 }
 0x21f   : > { %v830_v12 = vadd.f32 %v829_v57, %v732_v62 }
 0x220   : > { %v831_v59 = vpop.f32.mrf.mxu1 }
 0x221   : > { %v832_v2 = vadd.f32 %v831_v59, %v732_v62  ;;  %v888_v62 = vpop.permute.xlu1 %887 }
 0x222   : > { %v835_v63 = vpop.f32.mrf.mxu1 }
 0x223   : > { %v836_v7 = vadd.f32 %v835_v63, %v737_v61  ;;  %1822 = vtanh.f32 %v832_v2 }
 0x224   : > { %v837_v3 = vpop.f32.mrf.mxu1 }
 0x225   : > { %v838_v5 = vadd.f32 %v837_v3, %v737_v61 }
 0x226   : > { %v841_v8 = vpop.f32.mrf.mxu1 }
 0x227   : > { %v842_v9 = vadd.f32 %v841_v8, %v742_v54  ;;  %1824 = vtanh.f32 %v838_v5 }
 0x228   : > { %v843_v13 = vpop.f32.mrf.mxu1 }
 0x229   : > { %1826 = vtanh.f32 %v842_v9  ;;  %v844_v15 = vadd.f32 %v843_v13, %v742_v54  ;;  %v883_v54 = vpop.permute.xlu0 %882 }
 0x22a   : > { %1828 = vtanh.f32 %v836_v7 }
 0x22b   : > { %1830 = vtanh.f32 %v844_v15  ;;  %v1028_v15 = vld [vmem:[%s2402_s5 + $0x18] sm:$0xff] }
 0x22c   : > { %1832 = vtanh.f32 %v830_v12  ;;  %v898_v12 = vpop.permute.xlu1 %897 }
 0x22d   : > { %1834 = vtanh.f32 %v826_v14 }
 0x22e   : > { %1836 = vtanh.f32 %v824_v16 }
 0x230   : > { %v1823_v10 = vpop.eup %1822 }
 0x231   : > { %v857_v36 = vmul.f32 %v1823_v10, %v2147_v28 }
 0x233   : > { %v865_v44 = vadd.f32 %v2119_v58, %v857_v36 }
 0x234   : > { %v1825_v17 = vpop.eup %1824 }
 0x235   : > { %v859_v29 = vmul.f32 %v1825_v17, %v2138_v21  ;;  %v1027_v17 = vld [vmem:[%s2402_s5 + $0x10] sm:$0xff] }
 0x236   : > { %v1827_v19 = vpop.eup %1826 }
 0x237   : > { %v1829_v22 = vpop.eup %1828  ;;  %v860_v25 = vmul.f32 %v1827_v19, %v2132_v18  ;;  %v867_v40 = vadd.f32 %v2124_v0, %v859_v29  ;;  %v1025_v29 = vld [vmem:[%s2402_s5] sm:$0xff] }
 0x238   : > { %v1831_v23 = vpop.eup %1830  ;;  %v858_v32 = vmul.f32 %v1829_v22, %v2142_v24 }
 0x239   : > { %v1833_v26 = vpop.eup %1832  ;;  %v861_v27 = vmul.f32 %v1831_v23, %v2135_v20  ;;  %v868_v37 = vadd.f32 %v2127_v4, %v860_v25  ;;  %v1026_v23 = vld [vmem:[%s2402_s5 + $0x8] sm:$0xff] }
 0x23a   : > { %v1835_v30 = vpop.eup %1834  ;;  %v856_v39 = vmul.f32 %v1833_v26, %v2151_v31  ;;  %v866_v42 = vadd.f32 %v2122_v60, %v858_v32 }
 0x23b   : > { %v1837_v33 = vpop.eup %1836  ;;  %v869_v34 = vadd.f32 %v2129_v6, %v861_v27  ;;  %v855_v41 = vmul.f32 %v1835_v30, %v2156_v35 }
 0x23c   : > { %v854_v43 = vmul.f32 %v1837_v33, %v2161_v38  ;;  %v864_v45 = vadd.f32 %v2117_v55, %v856_v39 }
 0x23d   : > { %936 = vmatprep.subr.mxu1 %v869_v34  ;;  %v863_v46 = vadd.f32 %v2115_v53, %v855_v41 }
 0x23e   : > { %937 = vmatpush1.msra.mxu1 %v868_v37  ;;  %v862_v47 = vadd.f32 %v2113_v51, %v854_v43 }
 0x23f   : > { %938 = vmatprep.subr.mxu1 %v867_v40 }
 0x240   : > { %939 = vmatpush1.msra.mxu1 %v866_v42 }
 0x241   : > { %940 = vmatprep.subr.mxu1 %v865_v44 }
 0x242   : > { %941 = vmatpush1.msra.mxu1 %v864_v45 }
 0x243   : > { %942 = vmatprep.subr.mxu1 %v863_v46 }
 0x244   : > { %943 = vmatpush1.msra.mxu1 %v862_v47 }
 0x245   : > { %1575 = vmatmul.mubr.msk.f32.vlgmr.msra.gmra.mxu1 %vm744_vm1, %v1567_v48  ;;  %1706 = vmatprep.subr.mxu1 %v1028_v15 }
 0x246   : > { %982 = vmatprep.mubr.f32.mxu1 %v1863_v1  ;;  %1707 = vmatpush3.msra.mxu1 %v1028_v15 }
 0x247   : > { %1708 = vmatprep.subr.mxu1 %v1027_v17 }
 0x248   : > { %1709 = vmatpush3.msra.mxu1 %v1027_v17 }
 0x249   : > { %1576 = vmatmul.mubr.msk.f32.gmra.mxu1 %vm744_vm1, %v1568_v49  ;;  %1710 = vmatprep.subr.mxu1 %v1026_v23 }
 0x24a   : > { %988 = vmatprep.mubr.f32.mxu1 %v1863_v1  ;;  %1711 = vmatpush3.msra.mxu1 %v1026_v23 }
 0x24b   : > { %1712 = vmatprep.subr.mxu1 %v1025_v29 }
 0x24c   : > { %1713 = vmatpush3.msra.mxu1 %v1025_v29 }
 0x24d   : > { %1577 = vmatmul.mubr.msk.f32.gmra.mxu1 %vm744_vm1, %v1569_v50 }
 0x24e   : > { %994 = vmatprep.mubr.f32.mxu1 %v1863_v1  ;;  %v893_v1 = vpop.permute.xlu0 %892 }
 0x251   : > { %1578 = vmatmul.mubr.msk.f32.gmra.mxu1 %vm744_vm1, %v1570_v52 }
 0x305   : > { %v978_v56 = vpop.f32.mrf.mxu1 }
 0x306   : > { %v979_v57 = vadd.f32 %v978_v56, %v883_v54 }
 0x307   : > { %v980_v59 = vpop.f32.mrf.mxu1 }
 0x308   : > { %1838 = vtanh.f32 %v979_v57  ;;  %v981_v61 = vadd.f32 %v980_v59, %v883_v54 }
 0x309   : > { %v984_v63 = vpop.f32.mrf.mxu1 }
 0x30a   : > { %1840 = vtanh.f32 %v981_v61  ;;  %v985_v2 = vadd.f32 %v984_v63, %v888_v62 }
 0x30b   : > { %v986_v3 = vpop.f32.mrf.mxu1 }
 0x30c   : > { %1842 = vtanh.f32 %v985_v2  ;;  %v987_v5 = vadd.f32 %v986_v3, %v888_v62 }
 0x30d   : > { %v990_v7 = vpop.f32.mrf.mxu1 }
 0x30e   : > { %1844 = vtanh.f32 %v987_v5  ;;  %v991_v8 = vadd.f32 %v990_v7, %v893_v1 }
 0x30f   : > { %v992_v9 = vpop.f32.mrf.mxu1 }
 0x310   : > { %1846 = vtanh.f32 %v991_v8  ;;  %v993_v11 = vadd.f32 %v992_v9, %v893_v1 }
 0x311   : > { %v996_v13 = vpop.f32.mrf.mxu1 }
 0x312   : > { %1848 = vtanh.f32 %v993_v11  ;;  %v997_v14 = vadd.f32 %v996_v13, %v898_v12  ;;  %v2289_v13 = vld [vmem:[%s2403_s6] ss:$0 sm:$0xff] }
 0x313   : > { %v998_v16 = vpop.f32.mrf.mxu1 }
 0x314   : > { %1850 = vtanh.f32 %v997_v14  ;;  %v999_v10 = vadd.f32 %v998_v16, %v898_v12 }
 0x315   : > { %v1839_v19 = vpop.eup %1838 }
 0x316   : > { %1852 = vtanh.f32 %v999_v10  ;;  %v1009_v22 = vmul.f32 %v1839_v19, %v2161_v38 }
 0x317   : > { %v1841_v25 = vpop.eup %1840 }
 0x318   : > { %v1017_v26 = vadd.f32 %v2113_v51, %v1009_v22  ;;  %v1010_v27 = vmul.f32 %v1841_v25, %v2156_v35 }
 0x319   : > { %v1843_v30 = vpop.eup %1842 }
 0x31a   : > { %1036 = vxpose.xlu0.b32.start [1/4] (short) %v1017_v26, 128  ;;  %v1018_v38 = vadd.f32 %v2115_v53, %v1010_v27  ;;  %v1011_v32 = vmul.f32 %v1843_v30, %v2151_v31 }
 0x31b   : > { %v1845_v33 = vpop.eup %1844 }
 0x31c   : > { %1068 = vxpose.xlu1.b32.start [1/4] (short) %v1018_v38, 128  ;;  %v1019_v34 = vadd.f32 %v2117_v55, %v1011_v32  ;;  %v1012_v51 = vmul.f32 %v1845_v33, %v2147_v28 }
 0x31d   : > { %v1847_v35 = vpop.eup %1846 }
 0x31e   : > { %1037 = vxpose.xlu0.b32.cont [2/4] (short) %v1019_v34, 128  ;;  %v1020_v36 = vadd.f32 %v2119_v58, %v1012_v51  ;;  %v1013_v37 = vmul.f32 %v1847_v35, %v2142_v24 }
 0x31f   : > { %v1849_v39 = vpop.eup %1848 }
 0x320   : > { %1069 = vxpose.xlu1.b32.cont [2/4] (short) %v1020_v36, 128  ;;  %v1021_v40 = vadd.f32 %v2122_v60, %v1013_v37  ;;  %v1014_v53 = vmul.f32 %v1849_v39, %v2138_v21 }
 0x321   : > { %v1851_v31 = vpop.eup %1850 }
 0x322   : > { %1038 = vxpose.xlu0.b32.cont [3/4] (short) %v1021_v40, 128  ;;  %v1022_v41 = vadd.f32 %v2124_v0, %v1014_v53  ;;  %v1015_v55 = vmul.f32 %v1851_v31, %v2132_v18 }
 0x323   : > { %v1853_v42 = vpop.eup %1852 }
 0x324   : > { %1070 = vxpose.xlu1.b32.cont [3/4] (short) %v1022_v41, 128  ;;  %v1023_v28 = vadd.f32 %v2127_v4, %v1015_v55  ;;  %v1016_v58 = vmul.f32 %v1853_v42, %v2135_v20 }
 0x326   : > { %1039 = vxpose.xlu0.b32.end [4/4] (short) %v1023_v28, 128  ;;  %v1024_v24 = vadd.f32 %v2129_v6, %v1016_v58 }
 0x328   : > { %1071 = vxpose.xlu1.b32.end [4/4] (short) %v1024_v24, 128 }
 0x396   : > { %v1052_v43 = vpop.trf.xlu0 }
 0x397   : > { %1714 = vmatprep.mubr.msk.f32.mxu1 %vm744_vm1, %v1052_v43 }
 0x398   : > { %v1084_v60 = vpop.trf.xlu1 }
 0x39a   : > { %v1053_v21 = vpop.trf.xlu0 }
 0x39b   : > { %1715 = vmatmul.mubr.msk.f32.vlgmr.msra.gmra.mxu1 %vm744_vm1, %v1053_v21 }
 0x39c   : > { %v1085_v0 = vpop.trf.xlu1 }
 0x39e   : > { %v1054_v44 = vpop.trf.xlu0 }
 0x39f   : > { %1717 = vmatprep.mubr.msk.f32.mxu1 %vm744_vm1, %v1054_v44 }
 0x3a0   : > { %v1086_v45 = vpop.trf.xlu1 }
 0x3a2   : > { %v1055_v18 = vpop.trf.xlu0 }
 0x3a3   : > { %1718 = vmatmul.mubr.msk.f32.gmra.mxu1 %vm744_vm1, %v1055_v18 }
 0x3a4   : > { %v1087_v6 = vpop.trf.xlu1 }
 0x3a6   : > { %v1056_v4 = vpop.trf.xlu0 }
 0x3a7   : > { %1720 = vmatprep.mubr.msk.f32.mxu1 %vm744_vm1, %v1056_v4 }
 0x3a8   : > { %v1088_v47 = vpop.trf.xlu1 }
 0x3aa   : > { %v1057_v20 = vpop.trf.xlu0 }
 0x3ab   : > { %1721 = vmatmul.mubr.msk.f32.gmra.mxu1 %vm744_vm1, %v1057_v20 }
 0x3ac   : > { %v1089_v49 = vpop.trf.xlu1 }
 0x3ae   : > { %v1058_v46 = vpop.trf.xlu0 }
 0x3af   : > { %1723 = vmatprep.mubr.msk.f32.mxu1 %vm744_vm1, %v1058_v46 }
 0x3b0   : > { %v1090_v54 = vpop.trf.xlu1 }
 0x3b2   : > { %v1059_v48 = vpop.trf.xlu0 }
 0x3b3   : > { %1724 = vmatmul.mubr.msk.f32.gmra.mxu1 %vm744_vm1, %v1059_v48 }
 0x3b4   : > { %v1091_v57 = vpop.trf.xlu1 }
 0x3b6   : > { %v1060_v50 = vpop.trf.xlu0 }
 0x3b7   : > { %1726 = vmatprep.mubr.msk.f32.mxu1 %vm744_vm1, %v1060_v50 }
 0x3b8   : > { %v1092_v62 = vpop.trf.xlu1 }
 0x3ba   : > { %v1061_v52 = vpop.trf.xlu0 }
 0x3bb   : > { %1727 = vmatmul.mubr.msk.f32.gmra.mxu1 %vm744_vm1, %v1061_v52 }
 0x3bc   : > { %v1093_v2 = vpop.trf.xlu1 }
 0x3be   : > { %v1062_v56 = vpop.trf.xlu0 }
 0x3bf   : > { %1729 = vmatprep.mubr.msk.f32.mxu1 %vm744_vm1, %v1062_v56 }
 0x3c0   : > { %v1094_v1 = vpop.trf.xlu1 }
 0x3c2   : > { %v1063_v59 = vpop.trf.xlu0 }
 0x3c3   : > { %1730 = vmatmul.mubr.msk.f32.gmra.mxu1 %vm744_vm1, %v1063_v59 }
 0x3c4   : > { %v1095_v7 = vpop.trf.xlu1 }
 0x3c6   : > { %v1064_v61 = vpop.trf.xlu0 }
 0x3c7   : > { %1732 = vmatprep.mubr.msk.f32.mxu1 %vm744_vm1, %v1064_v61 }
 0x3c8   : > { %v1096_v8 = vpop.trf.xlu1 }
 0x3ca   : > { %v1065_v63 = vpop.trf.xlu0 }
 0x3cb   : > { %1733 = vmatmul.mubr.msk.f32.gmra.mxu1 %vm744_vm1, %v1065_v63 }
 0x3cc   : > { %v1097_v9 = vpop.trf.xlu1 }
 0x3ce   : > { %v1066_v3 = vpop.trf.xlu0 }
 0x3cf   : > { %1735 = vmatprep.mubr.msk.f32.mxu1 %vm744_vm1, %v1066_v3 }
 0x3d0   : > { %v1098_v11 = vpop.trf.xlu1 }
 0x3d2   : > { %v1067_v5 = vpop.trf.xlu0 }
 0x3d3   : > { %1736 = vmatmul.mubr.msk.f32.gmra.mxu1 %vm744_vm1, %v1067_v5 }
 0x3d4   : > { %1738 = vmatprep.mubr.msk.f32.mxu1 %vm744_vm1, %v1084_v60  ;;  %v1099_v12 = vpop.trf.xlu1 }
 0x3d7   : > { %1739 = vmatmul.mubr.msk.f32.gmra.mxu1 %vm744_vm1, %v1085_v0 }
 0x3d8   : > { %1741 = vmatprep.mubr.msk.f32.mxu1 %vm744_vm1, %v1086_v45 }
 0x3db   : > { %1742 = vmatmul.mubr.msk.f32.gmra.mxu1 %vm744_vm1, %v1087_v6 }
 0x3dc   : > { %1744 = vmatprep.mubr.msk.f32.mxu1 %vm744_vm1, %v1088_v47 }
 0x3df   : > { %1745 = vmatmul.mubr.msk.f32.gmra.mxu1 %vm744_vm1, %v1089_v49 }
 0x3e0   : > { %1747 = vmatprep.mubr.msk.f32.mxu1 %vm744_vm1, %v1090_v54 }
 0x3e3   : > { %1748 = vmatmul.mubr.msk.f32.gmra.mxu1 %vm744_vm1, %v1091_v57 }
 0x3e4   : > { %1750 = vmatprep.mubr.msk.f32.mxu1 %vm744_vm1, %v1092_v62 }
 0x3e7   : > { %1751 = vmatmul.mubr.msk.f32.gmra.mxu1 %vm744_vm1, %v1093_v2 }
 0x3e8   : > { %1753 = vmatprep.mubr.msk.f32.mxu1 %vm744_vm1, %v1094_v1 }
 0x3eb   : > { %1754 = vmatmul.mubr.msk.f32.gmra.mxu1 %vm744_vm1, %v1095_v7 }
 0x3ec   : > { %1756 = vmatprep.mubr.msk.f32.mxu1 %vm744_vm1, %v1096_v8 }
 0x3ef   : > { %1757 = vmatmul.mubr.msk.f32.gmra.mxu1 %vm744_vm1, %v1097_v9 }
 0x3f0   : > { %1759 = vmatprep.mubr.msk.f32.mxu1 %vm744_vm1, %v1098_v11 }
 0x3f3   : > { %1760 = vmatmul.mubr.msk.f32.gmra.mxu1 %vm744_vm1, %v1099_v12 }
 0x45b   : > { %v1716_v14 = vpop.f32.mrf.mxu1 }
 0x45c   : > { %v1268_v15 = vadd.f32 %v1716_v14, %v2289_v13 }
 0x45d   : > { %v1262_v16 = vpop.f32.mrf.mxu1 }
 0x45e   : > { %1423 = vst.msk [vmem:[%s2296_s21 + $0x8] sm:$0xff] %vm1421_vm2, %v1268_v15  ;;  %v1263_v10 = vadd.f32 %v2289_v13, %v1262_v16 }
 0x460   : > { %1422 = vst.msk [vmem:[%s2296_s21] sm:$0xff] %vm1421_vm2, %v1263_v10 }
 0x463   : > { %v1719_v17 = vpop.f32.mrf.mxu1 }
 0x464   : > { %v1278_v19 = vadd.f32 %v1719_v17, %v2289_v13 }
 0x465   : > { %v1272_v22 = vpop.f32.mrf.mxu1 }
 0x466   : > { %1425 = vst.msk [vmem:[%s2296_s21 + $0x18] sm:$0xff] %vm1421_vm2, %v1278_v19  ;;  %v1273_v23 = vadd.f32 %v2289_v13, %v1272_v22 }
 0x468   : > { %1424 = vst.msk [vmem:[%s2296_s21 + $0x10] sm:$0xff] %vm1421_vm2, %v1273_v23 }
 0x46b   : > { %v1722_v25 = vpop.f32.mrf.mxu1 }
 0x46c   : > { %v1288_v26 = vadd.f32 %v1722_v25, %v2289_v13 }
 0x46d   : > { %v1282_v27 = vpop.f32.mrf.mxu1 }
 0x46e   : > { %1427 = vst.msk [vmem:[%s2296_s21 + $0x28] sm:$0xff] %vm1421_vm2, %v1288_v26  ;;  %v1283_v29 = vadd.f32 %v2289_v13, %v1282_v27 }
 0x470   : > { %1426 = vst.msk [vmem:[%s2296_s21 + $0x20] sm:$0xff] %vm1421_vm2, %v1283_v29 }
 0x473   : > { %v1725_v30 = vpop.f32.mrf.mxu1 }
 0x474   : > { %v1298_v38 = vadd.f32 %v1725_v30, %v2289_v13 }
 0x475   : > { %v1292_v32 = vpop.f32.mrf.mxu1 }
 0x476   : > { %1429 = vst.msk [vmem:[%s2296_s21 + $0x38] sm:$0xff] %vm1421_vm2, %v1298_v38  ;;  %v1293_v33 = vadd.f32 %v2289_v13, %v1292_v32 }
 0x478   : > { %1428 = vst.msk [vmem:[%s2296_s21 + $0x30] sm:$0xff] %vm1421_vm2, %v1293_v33 }
 0x47b   : > { %v1728_v34 = vpop.f32.mrf.mxu1 }
 0x47c   : > { %v1308_v51 = vadd.f32 %v1728_v34, %v2289_v13 }
 0x47d   : > { %v1302_v35 = vpop.f32.mrf.mxu1 }
 0x47e   : > { %1431 = vst.msk [vmem:[%s2296_s21 + $0x48] sm:$0xff] %vm1421_vm2, %v1308_v51  ;;  %v1303_v36 = vadd.f32 %v2289_v13, %v1302_v35 }
 0x480   : > { %1430 = vst.msk [vmem:[%s2296_s21 + $0x40] sm:$0xff] %vm1421_vm2, %v1303_v36 }
 0x483   : > { %v1731_v37 = vpop.f32.mrf.mxu1 }
 0x484   : > { %v1318_v39 = vadd.f32 %v1731_v37, %v2289_v13 }
 0x485   : > { %v1312_v40 = vpop.f32.mrf.mxu1 }
 0x486   : > { %1433 = vst.msk [vmem:[%s2296_s21 + $0x58] sm:$0xff] %vm1421_vm2, %v1318_v39  ;;  %v1313_v53 = vadd.f32 %v2289_v13, %v1312_v40 }
 0x488   : > { %1432 = vst.msk [vmem:[%s2296_s21 + $0x50] sm:$0xff] %vm1421_vm2, %v1313_v53 }
 0x48b   : > { %v1734_v31 = vpop.f32.mrf.mxu1 }
 0x48c   : > { %v1328_v41 = vadd.f32 %v1734_v31, %v2289_v13 }
 0x48d   : > { %v1322_v55 = vpop.f32.mrf.mxu1 }
 0x48e   : > { %1435 = vst.msk [vmem:[%s2296_s21 + $0x68] sm:$0xff] %vm1421_vm2, %v1328_v41  ;;  %v1323_v42 = vadd.f32 %v2289_v13, %v1322_v55 }
 0x490   : > { %1434 = vst.msk [vmem:[%s2296_s21 + $0x60] sm:$0xff] %vm1421_vm2, %v1323_v42 }
 0x493   : > { %v1737_v28 = vpop.f32.mrf.mxu1 }
 0x494   : > { %v1338_v58 = vadd.f32 %v1737_v28, %v2289_v13 }
 0x495   : > { %v1332_v24 = vpop.f32.mrf.mxu1 }
 0x496   : > { %1437 = vst.msk [vmem:[%s2296_s21 + $0x78] sm:$0xff] %vm1421_vm2, %v1338_v58  ;;  %v1333_v43 = vadd.f32 %v2289_v13, %v1332_v24 }
 0x497   : > { %v1740_v60 = vpop.f32.mrf.mxu1 }
 0x498   : > { %1436 = vst.msk [vmem:[%s2296_s21 + $0x70] sm:$0xff] %vm1421_vm2, %v1333_v43  ;;  %v1348_v21 = vadd.f32 %v1740_v60, %v2289_v13 }
 0x499   : > { %v1342_v0 = vpop.f32.mrf.mxu1 }
 0x49a   : > { %1439 = vst.msk [vmem:[%s2296_s21 + $0x88] sm:$0xff] %vm1421_vm2, %v1348_v21  ;;  %v1343_v44 = vadd.f32 %v2289_v13, %v1342_v0 }
 0x49b   : > { %v1743_v18 = vpop.f32.mrf.mxu1 }
 0x49c   : > { %1438 = vst.msk [vmem:[%s2296_s21 + $0x80] sm:$0xff] %vm1421_vm2, %v1343_v44  ;;  %v1358_v45 = vadd.f32 %v1743_v18, %v2289_v13 }
 0x49d   : > { %v1352_v4 = vpop.f32.mrf.mxu1 }
 0x49e   : > { %1441 = vst.msk [vmem:[%s2296_s21 + $0x98] sm:$0xff] %vm1421_vm2, %v1358_v45  ;;  %v1353_v6 = vadd.f32 %v2289_v13, %v1352_v4 }
 0x49f   : > { %v1746_v20 = vpop.f32.mrf.mxu1 }
 0x4a0   : > { %1440 = vst.msk [vmem:[%s2296_s21 + $0x90] sm:$0xff] %vm1421_vm2, %v1353_v6  ;;  %v1368_v46 = vadd.f32 %v1746_v20, %v2289_v13 }
 0x4a1   : > { %v1362_v47 = vpop.f32.mrf.mxu1 }
 0x4a2   : > { %1443 = vst.msk [vmem:[%s2296_s21 + $0xa8] sm:$0xff] %vm1421_vm2, %v1368_v46  ;;  %v1363_v48 = vadd.f32 %v2289_v13, %v1362_v47 }
 0x4a3   : > { %v1749_v49 = vpop.f32.mrf.mxu1 }
 0x4a4   : > { %1442 = vst.msk [vmem:[%s2296_s21 + $0xa0] sm:$0xff] %vm1421_vm2, %v1363_v48  ;;  %v1378_v50 = vadd.f32 %v1749_v49, %v2289_v13 }
 0x4a5   : > { %v1372_v52 = vpop.f32.mrf.mxu1 }
 0x4a6   : > { %1445 = vst.msk [vmem:[%s2296_s21 + $0xb8] sm:$0xff] %vm1421_vm2, %v1378_v50  ;;  %v1373_v54 = vadd.f32 %v2289_v13, %v1372_v52 }
 0x4a7   : > { %v1752_v56 = vpop.f32.mrf.mxu1 }
 0x4a8   : > { %1444 = vst.msk [vmem:[%s2296_s21 + $0xb0] sm:$0xff] %vm1421_vm2, %v1373_v54  ;;  %v1388_v57 = vadd.f32 %v1752_v56, %v2289_v13 }
 0x4a9   : > { %v1382_v59 = vpop.f32.mrf.mxu1 }
 0x4aa   : > { %1447 = vst.msk [vmem:[%s2296_s21 + $0xc8] sm:$0xff] %vm1421_vm2, %v1388_v57  ;;  %v1383_v61 = vadd.f32 %v2289_v13, %v1382_v59 }
 0x4ab   : > { %v1755_v62 = vpop.f32.mrf.mxu1 }
 0x4ac   : > { %1446 = vst.msk [vmem:[%s2296_s21 + $0xc0] sm:$0xff] %vm1421_vm2, %v1383_v61  ;;  %v1398_v63 = vadd.f32 %v1755_v62, %v2289_v13 }
 0x4ad   : > { %v1392_v2 = vpop.f32.mrf.mxu1 }
 0x4ae   : > { %1449 = vst.msk [vmem:[%s2296_s21 + $0xd8] sm:$0xff] %vm1421_vm2, %v1398_v63  ;;  %v1393_v3 = vadd.f32 %v2289_v13, %v1392_v2 }
 0x4af   : > { %v1758_v5 = vpop.f32.mrf.mxu1 }
 0x4b0   : > { %1448 = vst.msk [vmem:[%s2296_s21 + $0xd0] sm:$0xff] %vm1421_vm2, %v1393_v3  ;;  %v1408_v1 = vadd.f32 %v1758_v5, %v2289_v13 }
 0x4b1   : > { %v1402_v7 = vpop.f32.mrf.mxu1 }
 0x4b2   : > { %1451 = vst.msk [vmem:[%s2296_s21 + $0xe8] sm:$0xff] %vm1421_vm2, %v1408_v1  ;;  %v1403_v8 = vadd.f32 %v2289_v13, %v1402_v7 }
 0x4b3   : > { %v1761_v9 = vpop.f32.mrf.mxu1 }
 0x4b4   : > { %1450 = vst.msk [vmem:[%s2296_s21 + $0xe0] sm:$0xff] %vm1421_vm2, %v1403_v8  ;;  %v1418_v11 = vadd.f32 %v1761_v9, %v2289_v13 }
 0x4b5   : > { %v1412_v12 = vpop.f32.mrf.mxu1 }
 0x4b6   : > { %1453 = vst.msk [vmem:[%s2296_s21 + $0xf8] sm:$0xff] %vm1421_vm2, %v1418_v11  ;;  %v1413_v14 = vadd.f32 %v2289_v13, %v1412_v12 }
 0x4b8   : > { %1452 = vst.msk [vmem:[%s2296_s21 + $0xf0] sm:$0xff] %vm1421_vm2, %v1413_v14 }
 0x4b9 PF: > { %s17_s24 = sadd.s32 1, %s1860_s24  }
 0x4ba   : > { %p14_p4 = scmp.ge.s32.totalorder %s17_s24, 6  }
 0x4bc   :  { %16 = sbr.rel (!%p14_p4) target bundleno = 1 (0x1), region = 80 }

</bundles_post_ra>
